<compile_context>
chip_gen: v7x
topology: tpu7x:2x2x1
jax: 0.10.0
libtpu: 0.0.40
codegen_flags: <defaults>
</compile_context>

<pallas_src>
from functools import partial
from typing import Dict, List

import numpy as np

import jax
import jax.numpy as jnp
from jax.experimental import pallas as pl
from jax.experimental.pallas import tpu as pltpu


# ----------------------------------------------------------------------------
# Small helpers (3x3 conv, stride 2, pad 1)
# ----------------------------------------------------------------------------
def _out_dim(size: int, k: int = 3, stride: int = 2, pad: int = 1) -> int:
    return (size + 2 * pad - k) // stride + 1


def _w_row_matrices(w4: np.ndarray, w_in: int, c_in: int, c_out: int,
                    k: int = 3, stride: int = 2, pad: int = 1) -> np.ndarray:
    """Fold the W-direction taps (and channels) of a 3x3/s2/p1 conv into one
    (W*Cin, Wo*Cout) matrix per vertical tap dy.  Returns (k, W*Cin, Wo*Cout)."""
    w_out = _out_dim(w_in, k, stride, pad)
    mats = np.zeros((k, w_in * c_in, w_out * c_out), np.float32)
    for dy in range(k):
        for j in range(w_out):
            for dx in range(k):
                w = stride * j + dx - pad
                if 0 <= w < w_in:
                    mats[dy, w * c_in:(w + 1) * c_in,
                         j * c_out:(j + 1) * c_out] = w4[dy, dx]
    return mats


def _row_select_matrices(h_in: int, imgs: int,
                         k: int = 3, stride: int = 2, pad: int = 1) -> np.ndarray:
    """0/1 matrices selecting input row h = 2*i + dy - 1 (zero when padded) for
    every output row i, block-diagonal over the `imgs` images in one tile.
    Returns (k, imgs*Ho, imgs*H)."""
    h_out = _out_dim(h_in, k, stride, pad)
    mats = np.zeros((k, imgs * h_out, imgs * h_in), np.float32)
    for dy in range(k):
        for b in range(imgs):
            for i in range(h_out):
                h = stride * i + dy - pad
                if 0 <= h < h_in:
                    mats[dy, b * h_out + i, b * h_in + h] = 1.0
    return mats


def _pick_images_per_tile(n_images: int) -> int:
    """Images per grid step.  Must divide N exactly (no garbage tail blocks) and
    keep the per-tile selection matrices small; for larger batches it yields >=2
    programs so the 'parallel' batch axis can shard across v7x's two TCs."""
    if n_images < 8:
        return n_images
    for bn in (8, 4):                      # bn*Ho stays a multiple of 8 at every stage
        if n_images % bn == 0 and n_images // bn >= 2:
            return bn
    return n_images


# ----------------------------------------------------------------------------
# Pallas kernel: all three stages fused, activations VMEM-resident.
# Per stage:  y = SiLU( sum_dy (S_dy @ x) @ Wrow_dy + b )   (bf16 MXU, f32 epilogue)
# ----------------------------------------------------------------------------
def _fused_backbone_kernel(x_ref, w1_ref, s1_ref, b1_ref,
                           w2_ref, s2_ref, b2_ref,
                           w3_ref, s3_ref, b3_ref,
                           f1_ref, f2_ref, f3_ref):
    def stage(act_bf16, w_ref, s_ref, b_ref, o_ref):
        acc = None
        for dy in range(3):                      # static unroll, 3 vertical taps
            # Row selection: exact 0/1 gather of bf16 rows (f32 accumulate is exact),
            # so casting back to bf16 is lossless.
            gathered = jnp.dot(s_ref[dy], act_bf16,
                               preferred_element_type=jnp.float32).astype(jnp.bfloat16)
            part = jnp.dot(gathered, w_ref[dy],
                           preferred_element_type=jnp.float32)
            acc = part if acc is None else acc + part
        acc = acc + b_ref[...]                   # f32 bias
        y = acc * jax.nn.sigmoid(acc)            # SiLU in f32 (EUP); keep f32 for v5e
        y_bf16 = y.astype(jnp.bfloat16)
        o_ref[...] = y_bf16                      # bf16 writeback (halved store bytes)
        return y_bf16

    y1 = stage(x_ref[...], w1_ref, s1_ref, b1_ref, f1_ref)
    y2 = stage(y1, w2_ref, s2_ref, b2_ref, f2_ref)
    stage(y2, w3_ref, s3_ref, b3_ref, f3_ref)


@partial(jax.jit, static_argnames=("imgs_per_tile", "height"))
def _fused_backbone_call(x_rows, w1, s1, b1, w2, s2, b2, w3, s3, b3, *,
                         imgs_per_tile: int, height: int):
    rows0 = x_rows.shape[0]
    n_images = rows0 // height
    bn = imgs_per_tile
    assert n_images % bn == 0, "images-per-tile must divide the batch"
    grid = (n_images // bn,)

    h0 = height
    h1, h2, h3 = _out_dim(h0), _out_dim(_out_dim(h0)), _out_dim(_out_dim(_out_dim(h0)))
    d0 = x_rows.shape[1]
    d1, d2, d3 = w1.shape[2], w2.shape[2], w3.shape[2]

    def act_spec(rows_per_img, width):          # tiled along the image grid axis
        return pl.BlockSpec((bn * rows_per_img, width), lambda i: (i, 0))

    def const_spec(arr):                        # grid-invariant: DMA'd once, VMEM-resident
        nd = arr.ndim
        return pl.BlockSpec(arr.shape, lambda i, _nd=nd: (0,) * _nd)

    return pl.pallas_call(
        _fused_backbone_kernel,
        out_shape=(jax.ShapeDtypeStruct((n_images * h1, d1), jnp.bfloat16),
                   jax.ShapeDtypeStruct((n_images * h2, d2), jnp.bfloat16),
                   jax.ShapeDtypeStruct((n_images * h3, d3), jnp.bfloat16)),
        grid_spec=pl.GridSpec(
            grid=grid,
            in_specs=[act_spec(h0, d0),
                      const_spec(w1), const_spec(s1), const_spec(b1),
                      const_spec(w2), const_spec(s2), const_spec(b2),
                      const_spec(w3), const_spec(s3), const_spec(b3)],
            out_specs=(act_spec(h1, d1), act_spec(h2, d2), act_spec(h3, d3)),
        ),
        compiler_params=pltpu.CompilerParams(
            dimension_semantics=("parallel",),   # shards image tiles across TCs on v7x
            vmem_limit_bytes=32 * 1024 * 1024,   # <1 MiB actually used; safe on v7x too
        ),
    )(x_rows, w1, s1, b1, w2, s2, b2, w3, s3, b3)


# ----------------------------------------------------------------------------
# Concrete backbone implementing the BaseBackbone contract
# ----------------------------------------------------------------------------
class PallasSimpleBackbone:
    """Concrete BaseBackbone: 3 strided conv+SiLU stages -> 3 feature maps."""

    def __init__(self, in_channels: int = 4, image_hw=(16, 16), logger=None):
        self.logger = logger
        self.out_channels: List[int] = [8, 16, 32]
        self.in_channels = in_channels
        self.image_hw = tuple(image_hw)

        # "True" conv parameters (torch-like layout): w (9*Cin, Cout), b (Cout,)
        key = jax.random.PRNGKey(0)
        self.conv_params = []
        c_prev = in_channels
        for c_out in self.out_channels:
            kw, kb, key = jax.random.split(key, 3)
            fan_in = 3 * 3 * c_prev
            w = (jax.random.normal(kw, (fan_in, c_out), jnp.float32)
                 / np.sqrt(float(fan_in)))
            b = 0.01 * jax.random.normal(kb, (c_out,), jnp.float32)
            self.conv_params.append((w, b))
            c_prev = c_out

        # Per-stage batch-independent structures: W-folded tap matrices + bias rows.
        self.w_stacks, self.bias_rows, self.stage_spatial = [], [], []
        H, W = self.image_hw
        c_prev = in_channels
        for (w, b), c_out in zip(self.conv_params, self.out_channels):
            w4 = np.asarray(w, np.float32).reshape(3, 3, c_prev, c_out)
            Ho, Wo = _out_dim(H), _out_dim(W)
            self.w_stacks.append(jnp.asarray(
                _w_row_matrices(w4, W, c_prev, c_out), jnp.bfloat16))
            self.bias_rows.append(jnp.asarray(
                np.tile(np.asarray(b, np.float32), Wo)[None, :], jnp.float32))
            self.stage_spatial.append((Ho, Wo))
            H, W, c_prev = Ho, Wo, c_out

        self._s_cache = {}   # imgs_per_tile -> (S1, S2, S3)

    def _select_mats(self, imgs_per_tile: int):
        if imgs_per_tile not in self._s_cache:
            mats = []
            h = self.image_hw[0]
            for _ in self.out_channels:
                mats.append(jnp.asarray(_row_select_matrices(h, imgs_per_tile),
                                        jnp.bfloat16))
                h = _out_dim(h)
            self._s_cache[imgs_per_tile] = tuple(mats)
        return self._s_cache[imgs_per_tile]

    def forward(self, x_nchw: jax.Array) -> List[jax.Array]:
        """NCHW input -> list of NCHW feature maps (torch-like API, bf16)."""
        N, C, H, W = x_nchw.shape
        assert (H, W) == self.image_hw and C == self.in_channels
        # rows = (n, h), cols = (w, c); lane-friendly 2-D activation layout.
        x_rows = (jnp.transpose(x_nchw, (0, 2, 3, 1))
                  .astype(jnp.bfloat16)
                  .reshape(N * H, W * C))

        bn = _pick_images_per_tile(N)
        s1, s2, s3 = self._select_mats(bn)
        w1, w2, w3 = self.w_stacks
        b1, b2, b3 = self.bias_rows
        f1, f2, f3 = _fused_backbone_call(x_rows, w1, s1, b1, w2, s2, b2, w3, s3, b3,
                                          imgs_per_tile=bn, height=H)

        feats = []
        for y, (Ho, Wo), c_out in zip((f1, f2, f3), self.stage_spatial,
                                      self.out_channels):
            feats.append(jnp.transpose(y.reshape(N, Ho, Wo, c_out), (0, 3, 1, 2)))
        return feats

    def get_info(self) -> Dict:
        return {
            "name": "PallasSimpleBackbone",
            "out_channels": self.out_channels,
            "stages": len(self.out_channels),
            "stride_per_stage": 2,
            "fused_single_kernel": True,
            "weight_formulation": "row-select + W-folded taps (no dense Toeplitz)",
        }

    def validate_output(self, features: List[jax.Array], expected_channels: List[int]):
        if len(features) != len(expected_channels) and self.logger:
            self.logger.warning(
                f"⚠️ Jumlah feature maps ({len(features)}) tidak sesuai dengan "
                f"jumlah expected channels ({len(expected_channels)})"
            )
        for i, (feat, ch) in enumerate(zip(features, expected_channels)):
            if feat.shape[1] != ch and self.logger:
                self.logger.warning(
                    f"⚠️ Feature map {i} memiliki {feat.shape[1]} channels, "
                    f"diharapkan {ch} channels"
                )

    # freeze/unfreeze have no meaning for inference-only JAX params.
    # TODO(synk): load_state_dict_from_path (torch checkpoint I/O) has no Pallas equivalent.


# ----------------------------------------------------------------------------
# Reference (pure JAX im2col conv) for correctness check.  Mirrors the kernel's
# bf16-operand / f32-accumulate chain and bf16 stage outputs.
# ----------------------------------------------------------------------------
def _im2col(x_nhwc, k=3, stride=2, pad=1):
    N, H, W, C = x_nhwc.shape
    xp = jnp.pad(x_nhwc, ((0, 0), (pad, pad), (pad, pad), (0, 0)))
    Ho = (H + 2 * pad - k) // stride + 1
    Wo = (W + 2 * pad - k) // stride + 1
    cols = []
    for dy in range(k):
        for dx in range(k):
            cols.append(
                xp[:, dy:dy + stride * Ho:stride, dx:dx + stride * Wo:stride, :]
            )
    patches = jnp.concatenate(cols, axis=-1)
    return patches.reshape(N * Ho * Wo, k * k * C), (N, Ho, Wo)


def _reference_forward(backbone: PallasSimpleBackbone, x_nchw: jax.Array):
    def q(v):  # mimic bf16 quantization used on the MXU operands / stage outputs
        return v.astype(jnp.bfloat16).astype(jnp.float32)

    x = q(jnp.transpose(x_nchw, (0, 2, 3, 1)))
    feats = []
    for (w, b) in backbone.conv_params:
        patches, (N, Ho, Wo) = _im2col(x, 3, 2, 1)
        y = q(patches) @ q(w) + b[None, :]
        y = y * jax.nn.sigmoid(y)
        y = q(y)                                   # kernel stores/chains bf16 activations
        x = y.reshape(N, Ho, Wo, -1)
        feats.append(jnp.transpose(x, (0, 3, 1, 2)))
    return feats


if __name__ == "__main__":
    key = jax.random.PRNGKey(0)
    x = jax.random.normal(key, (2, 4, 16, 16), jnp.float32)  # NCHW, like torch

    backbone = PallasSimpleBackbone(in_channels=4, image_hw=(16, 16))
    feats = backbone.forward(x)
    feats = [jax.block_until_ready(f) for f in feats]

    # contract checks
    backbone.validate_output(feats, backbone.out_channels)
    assert [tuple(f.shape) for f in feats] == [(2, 8, 8, 8), (2, 16, 4, 4), (2, 32, 2, 2)]

    # numerical check vs pure-JAX reference.  Both paths emit bf16 feature maps,
    # so accumulation-order differences can flip the last bf16 bit (~0.01-0.03 at
    # these magnitudes); 5e-2 still catches any structural error (O(0.5+)).
    ref = _reference_forward(backbone, x)
    for f, r in zip(feats, ref):
        err = float(jnp.max(jnp.abs(f.astype(jnp.float32) - r.astype(jnp.float32))))
        assert err < 5e-2, f"max abs err {err}"

    print("KERNEL_OK")
</pallas_src>

<mosaic_0001>
module attributes {stable_mosaic.version = 11 : i64} {
  func.func @_fused_backbone_kernel(%arg0: i32, %arg1: memref<32x64xbf16, #tpu.memory_space<vmem>>, %arg2: memref<3x64x64xbf16, #tpu.memory_space<vmem>>, %arg3: memref<3x16x32xbf16, #tpu.memory_space<vmem>>, %arg4: memref<1x64xf32, #tpu.memory_space<vmem>>, %arg5: memref<3x64x64xbf16, #tpu.memory_space<vmem>>, %arg6: memref<3x8x16xbf16, #tpu.memory_space<vmem>>, %arg7: memref<1x64xf32, #tpu.memory_space<vmem>>, %arg8: memref<3x64x64xbf16, #tpu.memory_space<vmem>>, %arg9: memref<3x4x8xbf16, #tpu.memory_space<vmem>>, %arg10: memref<1x64xf32, #tpu.memory_space<vmem>>, %arg11: memref<16x64xbf16, #tpu.memory_space<vmem>>, %arg12: memref<8x64xbf16, #tpu.memory_space<vmem>>, %arg13: memref<4x64xbf16, #tpu.memory_space<vmem>>) attributes {dimension_semantics = [#tpu.dimension_semantics<parallel>], iteration_bounds = array<i64: 1>, scalar_prefetch = 0 : i64, scratch_operands = 0 : i64, tpu.core_type = #tpu.core_type<tc>, window_params = [{transform_indices = @transform_0, window_bounds = array<i64: 32, 64>}, {pipeline_mode = #tpu.pipeline_mode<synchronous>, transform_indices = @transform_1, window_bounds = array<i64: 3, 64, 64>}, {pipeline_mode = #tpu.pipeline_mode<synchronous>, transform_indices = @transform_2, window_bounds = array<i64: 3, 16, 32>}, {pipeline_mode = #tpu.pipeline_mode<synchronous>, transform_indices = @transform_3, window_bounds = array<i64: 1, 64>}, {pipeline_mode = #tpu.pipeline_mode<synchronous>, transform_indices = @transform_4, window_bounds = array<i64: 3, 64, 64>}, {pipeline_mode = #tpu.pipeline_mode<synchronous>, transform_indices = @transform_5, window_bounds = array<i64: 3, 8, 16>}, {pipeline_mode = #tpu.pipeline_mode<synchronous>, transform_indices = @transform_6, window_bounds = array<i64: 1, 64>}, {pipeline_mode = #tpu.pipeline_mode<synchronous>, transform_indices = @transform_7, window_bounds = array<i64: 3, 64, 64>}, {pipeline_mode = #tpu.pipeline_mode<synchronous>, transform_indices = @transform_8, window_bounds = array<i64: 3, 4, 8>}, {pipeline_mode = #tpu.pipeline_mode<synchronous>, transform_indices = @transform_9, window_bounds = array<i64: 1, 64>}, {transform_indices = @transform_10, window_bounds = array<i64: 16, 64>}, {transform_indices = @transform_11, window_bounds = array<i64: 8, 64>}, {transform_indices = @transform_12, window_bounds = array<i64: 4, 64>}]} {
    %c0 = arith.constant 0 : index
    %c0_0 = arith.constant 0 : index
    %0 = vector.load %arg1[%c0, %c0_0] : memref<32x64xbf16, #tpu.memory_space<vmem>>, vector<32x64xbf16>
    %c0_1 = arith.constant 0 : index
    %c0_2 = arith.constant 0 : index
    %c0_3 = arith.constant 0 : index
    %1 = vector.load %arg3[%c0_1, %c0_2, %c0_3] : memref<3x16x32xbf16, #tpu.memory_space<vmem>>, vector<1x16x32xbf16>
    %2 = vector.shape_cast %1 : vector<1x16x32xbf16> to vector<16x32xbf16>
    %cst = arith.constant dense<0.000000e+00> : vector<16x64xf32>
    %3 = tpu.matmul %2, %0, %cst {dimension_numbers = #tpu.dot_dimension_numbers<[1], [0], [0], [1], [0, 0, 1, 1], [], []>} : vector<16x32xbf16>, vector<32x64xbf16>, vector<16x64xf32> -> vector<16x64xf32>
    %4 = arith.truncf %3 : vector<16x64xf32> to vector<16x64xbf16>
    %c0_4 = arith.constant 0 : index
    %c0_5 = arith.constant 0 : index
    %c0_6 = arith.constant 0 : index
    %5 = vector.load %arg2[%c0_4, %c0_5, %c0_6] : memref<3x64x64xbf16, #tpu.memory_space<vmem>>, vector<1x64x64xbf16>
    %6 = vector.shape_cast %5 : vector<1x64x64xbf16> to vector<64x64xbf16>
    %cst_7 = arith.constant dense<0.000000e+00> : vector<16x64xf32>
    %7 = tpu.matmul %4, %6, %cst_7 {dimension_numbers = #tpu.dot_dimension_numbers<[1], [0], [0], [1], [0, 0, 1, 1], [], []>} : vector<16x64xbf16>, vector<64x64xbf16>, vector<16x64xf32> -> vector<16x64xf32>
    %c1 = arith.constant 1 : index
    %c0_8 = arith.constant 0 : index
    %c0_9 = arith.constant 0 : index
    %8 = vector.load %arg3[%c1, %c0_8, %c0_9] : memref<3x16x32xbf16, #tpu.memory_space<vmem>>, vector<1x16x32xbf16>
    %9 = vector.shape_cast %8 : vector<1x16x32xbf16> to vector<16x32xbf16>
    %cst_10 = arith.constant dense<0.000000e+00> : vector<16x64xf32>
    %10 = tpu.matmul %9, %0, %cst_10 {dimension_numbers = #tpu.dot_dimension_numbers<[1], [0], [0], [1], [0, 0, 1, 1], [], []>} : vector<16x32xbf16>, vector<32x64xbf16>, vector<16x64xf32> -> vector<16x64xf32>
    %11 = arith.truncf %10 : vector<16x64xf32> to vector<16x64xbf16>
    %c1_11 = arith.constant 1 : index
    %c0_12 = arith.constant 0 : index
    %c0_13 = arith.constant 0 : index
    %12 = vector.load %arg2[%c1_11, %c0_12, %c0_13] : memref<3x64x64xbf16, #tpu.memory_space<vmem>>, vector<1x64x64xbf16>
    %13 = vector.shape_cast %12 : vector<1x64x64xbf16> to vector<64x64xbf16>
    %cst_14 = arith.constant dense<0.000000e+00> : vector<16x64xf32>
    %14 = tpu.matmul %11, %13, %cst_14 {dimension_numbers = #tpu.dot_dimension_numbers<[1], [0], [0], [1], [0, 0, 1, 1], [], []>} : vector<16x64xbf16>, vector<64x64xbf16>, vector<16x64xf32> -> vector<16x64xf32>
    %15 = arith.addf %7, %14 : vector<16x64xf32>
    %c2 = arith.constant 2 : index
    %c0_15 = arith.constant 0 : index
    %c0_16 = arith.constant 0 : index
    %16 = vector.load %arg3[%c2, %c0_15, %c0_16] : memref<3x16x32xbf16, #tpu.memory_space<vmem>>, vector<1x16x32xbf16>
    %17 = vector.shape_cast %16 : vector<1x16x32xbf16> to vector<16x32xbf16>
    %cst_17 = arith.constant dense<0.000000e+00> : vector<16x64xf32>
    %18 = tpu.matmul %17, %0, %cst_17 {dimension_numbers = #tpu.dot_dimension_numbers<[1], [0], [0], [1], [0, 0, 1, 1], [], []>} : vector<16x32xbf16>, vector<32x64xbf16>, vector<16x64xf32> -> vector<16x64xf32>
    %19 = arith.truncf %18 : vector<16x64xf32> to vector<16x64xbf16>
    %c2_18 = arith.constant 2 : index
    %c0_19 = arith.constant 0 : index
    %c0_20 = arith.constant 0 : index
    %20 = vector.load %arg2[%c2_18, %c0_19, %c0_20] : memref<3x64x64xbf16, #tpu.memory_space<vmem>>, vector<1x64x64xbf16>
    %21 = vector.shape_cast %20 : vector<1x64x64xbf16> to vector<64x64xbf16>
    %cst_21 = arith.constant dense<0.000000e+00> : vector<16x64xf32>
    %22 = tpu.matmul %19, %21, %cst_21 {dimension_numbers = #tpu.dot_dimension_numbers<[1], [0], [0], [1], [0, 0, 1, 1], [], []>} : vector<16x64xbf16>, vector<64x64xbf16>, vector<16x64xf32> -> vector<16x64xf32>
    %23 = arith.addf %15, %22 : vector<16x64xf32>
    %c0_22 = arith.constant 0 : index
    %c0_23 = arith.constant 0 : index
    %24 = vector.load %arg4[%c0_22, %c0_23] : memref<1x64xf32, #tpu.memory_space<vmem>>, vector<1x64xf32>
    %25 = vector.broadcast %24 : vector<1x64xf32> to vector<16x64xf32>
    %26 = arith.addf %23, %25 : vector<16x64xf32>
    %27 = arith.negf %26 : vector<16x64xf32>
    %28 = math.exp %27 : vector<16x64xf32>
    %cst_24 = arith.constant 1.000000e+00 : f32
    %29 = vector.broadcast %cst_24 : f32 to vector<16x64xf32>
    %30 = arith.addf %29, %28 : vector<16x64xf32>
    %31 = arith.divf %29, %30 : vector<16x64xf32>
    %32 = arith.mulf %26, %31 : vector<16x64xf32>
    %33 = arith.truncf %32 : vector<16x64xf32> to vector<16x64xbf16>
    %c0_25 = arith.constant 0 : index
    %c0_26 = arith.constant 0 : index
    %34 = vector.load %arg11[%c0_25, %c0_26] : memref<16x64xbf16, #tpu.memory_space<vmem>>, vector<16x64xbf16>
    tpu.vector_store %arg11[%c0_25, %c0_26], %33 {strides = array<i32>} : memref<16x64xbf16, #tpu.memory_space<vmem>>, vector<16x64xbf16>,
    %c0_27 = arith.constant 0 : index
    %c0_28 = arith.constant 0 : index
    %c0_29 = arith.constant 0 : index
    %35 = vector.load %arg6[%c0_27, %c0_28, %c0_29] : memref<3x8x16xbf16, #tpu.memory_space<vmem>>, vector<1x8x16xbf16>
    %36 = vector.shape_cast %35 : vector<1x8x16xbf16> to vector<8x16xbf16>
    %cst_30 = arith.constant dense<0.000000e+00> : vector<8x64xf32>
    %37 = tpu.matmul %36, %33, %cst_30 {dimension_numbers = #tpu.dot_dimension_numbers<[1], [0], [0], [1], [0, 0, 1, 1], [], []>} : vector<8x16xbf16>, vector<16x64xbf16>, vector<8x64xf32> -> vector<8x64xf32>
    %38 = arith.truncf %37 : vector<8x64xf32> to vector<8x64xbf16>
    %c0_31 = arith.constant 0 : index
    %c0_32 = arith.constant 0 : index
    %c0_33 = arith.constant 0 : index
    %39 = vector.load %arg5[%c0_31, %c0_32, %c0_33] : memref<3x64x64xbf16, #tpu.memory_space<vmem>>, vector<1x64x64xbf16>
    %40 = vector.shape_cast %39 : vector<1x64x64xbf16> to vector<64x64xbf16>
    %cst_34 = arith.constant dense<0.000000e+00> : vector<8x64xf32>
    %41 = tpu.matmul %38, %40, %cst_34 {dimension_numbers = #tpu.dot_dimension_numbers<[1], [0], [0], [1], [0, 0, 1, 1], [], []>} : vector<8x64xbf16>, vector<64x64xbf16>, vector<8x64xf32> -> vector<8x64xf32>
    %c1_35 = arith.constant 1 : index
    %c0_36 = arith.constant 0 : index
    %c0_37 = arith.constant 0 : index
    %42 = vector.load %arg6[%c1_35, %c0_36, %c0_37] : memref<3x8x16xbf16, #tpu.memory_space<vmem>>, vector<1x8x16xbf16>
    %43 = vector.shape_cast %42 : vector<1x8x16xbf16> to vector<8x16xbf16>
    %cst_38 = arith.constant dense<0.000000e+00> : vector<8x64xf32>
    %44 = tpu.matmul %43, %33, %cst_38 {dimension_numbers = #tpu.dot_dimension_numbers<[1], [0], [0], [1], [0, 0, 1, 1], [], []>} : vector<8x16xbf16>, vector<16x64xbf16>, vector<8x64xf32> -> vector<8x64xf32>
    %45 = arith.truncf %44 : vector<8x64xf32> to vector<8x64xbf16>
    %c1_39 = arith.constant 1 : index
    %c0_40 = arith.constant 0 : index
    %c0_41 = arith.constant 0 : index
    %46 = vector.load %arg5[%c1_39, %c0_40, %c0_41] : memref<3x64x64xbf16, #tpu.memory_space<vmem>>, vector<1x64x64xbf16>
    %47 = vector.shape_cast %46 : vector<1x64x64xbf16> to vector<64x64xbf16>
    %cst_42 = arith.constant dense<0.000000e+00> : vector<8x64xf32>
    %48 = tpu.matmul %45, %47, %cst_42 {dimension_numbers = #tpu.dot_dimension_numbers<[1], [0], [0], [1], [0, 0, 1, 1], [], []>} : vector<8x64xbf16>, vector<64x64xbf16>, vector<8x64xf32> -> vector<8x64xf32>
    %49 = arith.addf %41, %48 : vector<8x64xf32>
    %c2_43 = arith.constant 2 : index
    %c0_44 = arith.constant 0 : index
    %c0_45 = arith.constant 0 : index
    %50 = vector.load %arg6[%c2_43, %c0_44, %c0_45] : memref<3x8x16xbf16, #tpu.memory_space<vmem>>, vector<1x8x16xbf16>
    %51 = vector.shape_cast %50 : vector<1x8x16xbf16> to vector<8x16xbf16>
    %cst_46 = arith.constant dense<0.000000e+00> : vector<8x64xf32>
    %52 = tpu.matmul %51, %33, %cst_46 {dimension_numbers = #tpu.dot_dimension_numbers<[1], [0], [0], [1], [0, 0, 1, 1], [], []>} : vector<8x16xbf16>, vector<16x64xbf16>, vector<8x64xf32> -> vector<8x64xf32>
    %53 = arith.truncf %52 : vector<8x64xf32> to vector<8x64xbf16>
    %c2_47 = arith.constant 2 : index
    %c0_48 = arith.constant 0 : index
    %c0_49 = arith.constant 0 : index
    %54 = vector.load %arg5[%c2_47, %c0_48, %c0_49] : memref<3x64x64xbf16, #tpu.memory_space<vmem>>, vector<1x64x64xbf16>
    %55 = vector.shape_cast %54 : vector<1x64x64xbf16> to vector<64x64xbf16>
    %cst_50 = arith.constant dense<0.000000e+00> : vector<8x64xf32>
    %56 = tpu.matmul %53, %55, %cst_50 {dimension_numbers = #tpu.dot_dimension_numbers<[1], [0], [0], [1], [0, 0, 1, 1], [], []>} : vector<8x64xbf16>, vector<64x64xbf16>, vector<8x64xf32> -> vector<8x64xf32>
    %57 = arith.addf %49, %56 : vector<8x64xf32>
    %c0_51 = arith.constant 0 : index
    %c0_52 = arith.constant 0 : index
    %58 = vector.load %arg7[%c0_51, %c0_52] : memref<1x64xf32, #tpu.memory_space<vmem>>, vector<1x64xf32>
    %59 = vector.broadcast %58 : vector<1x64xf32> to vector<8x64xf32>
    %60 = arith.addf %57, %59 : vector<8x64xf32>
    %61 = arith.negf %60 : vector<8x64xf32>
    %62 = math.exp %61 : vector<8x64xf32>
    %cst_53 = arith.constant 1.000000e+00 : f32
    %63 = vector.broadcast %cst_53 : f32 to vector<8x64xf32>
    %64 = arith.addf %63, %62 : vector<8x64xf32>
    %65 = arith.divf %63, %64 : vector<8x64xf32>
    %66 = arith.mulf %60, %65 : vector<8x64xf32>
    %67 = arith.truncf %66 : vector<8x64xf32> to vector<8x64xbf16>
    %c0_54 = arith.constant 0 : index
    %c0_55 = arith.constant 0 : index
    %68 = vector.load %arg12[%c0_54, %c0_55] : memref<8x64xbf16, #tpu.memory_space<vmem>>, vector<8x64xbf16>
    tpu.vector_store %arg12[%c0_54, %c0_55], %67 {strides = array<i32>} : memref<8x64xbf16, #tpu.memory_space<vmem>>, vector<8x64xbf16>,
    %c0_56 = arith.constant 0 : index
    %c0_57 = arith.constant 0 : index
    %c0_58 = arith.constant 0 : index
    %69 = vector.load %arg9[%c0_56, %c0_57, %c0_58] : memref<3x4x8xbf16, #tpu.memory_space<vmem>>, vector<1x4x8xbf16>
    %70 = vector.shape_cast %69 : vector<1x4x8xbf16> to vector<4x8xbf16>
    %cst_59 = arith.constant dense<0.000000e+00> : vector<4x64xf32>
    %71 = tpu.matmul %70, %67, %cst_59 {dimension_numbers = #tpu.dot_dimension_numbers<[1], [0], [0], [1], [0, 0, 1, 1], [], []>} : vector<4x8xbf16>, vector<8x64xbf16>, vector<4x64xf32> -> vector<4x64xf32>
    %72 = arith.truncf %71 : vector<4x64xf32> to vector<4x64xbf16>
    %c0_60 = arith.constant 0 : index
    %c0_61 = arith.constant 0 : index
    %c0_62 = arith.constant 0 : index
    %73 = vector.load %arg8[%c0_60, %c0_61, %c0_62] : memref<3x64x64xbf16, #tpu.memory_space<vmem>>, vector<1x64x64xbf16>
    %74 = vector.shape_cast %73 : vector<1x64x64xbf16> to vector<64x64xbf16>
    %cst_63 = arith.constant dense<0.000000e+00> : vector<4x64xf32>
    %75 = tpu.matmul %72, %74, %cst_63 {dimension_numbers = #tpu.dot_dimension_numbers<[1], [0], [0], [1], [0, 0, 1, 1], [], []>} : vector<4x64xbf16>, vector<64x64xbf16>, vector<4x64xf32> -> vector<4x64xf32>
    %c1_64 = arith.constant 1 : index
    %c0_65 = arith.constant 0 : index
    %c0_66 = arith.constant 0 : index
    %76 = vector.load %arg9[%c1_64, %c0_65, %c0_66] : memref<3x4x8xbf16, #tpu.memory_space<vmem>>, vector<1x4x8xbf16>
    %77 = vector.shape_cast %76 : vector<1x4x8xbf16> to vector<4x8xbf16>
    %cst_67 = arith.constant dense<0.000000e+00> : vector<4x64xf32>
    %78 = tpu.matmul %77, %67, %cst_67 {dimension_numbers = #tpu.dot_dimension_numbers<[1], [0], [0], [1], [0, 0, 1, 1], [], []>} : vector<4x8xbf16>, vector<8x64xbf16>, vector<4x64xf32> -> vector<4x64xf32>
    %79 = arith.truncf %78 : vector<4x64xf32> to vector<4x64xbf16>
    %c1_68 = arith.constant 1 : index
    %c0_69 = arith.constant 0 : index
    %c0_70 = arith.constant 0 : index
    %80 = vector.load %arg8[%c1_68, %c0_69, %c0_70] : memref<3x64x64xbf16, #tpu.memory_space<vmem>>, vector<1x64x64xbf16>
    %81 = vector.shape_cast %80 : vector<1x64x64xbf16> to vector<64x64xbf16>
    %cst_71 = arith.constant dense<0.000000e+00> : vector<4x64xf32>
    %82 = tpu.matmul %79, %81, %cst_71 {dimension_numbers = #tpu.dot_dimension_numbers<[1], [0], [0], [1], [0, 0, 1, 1], [], []>} : vector<4x64xbf16>, vector<64x64xbf16>, vector<4x64xf32> -> vector<4x64xf32>
    %83 = arith.addf %75, %82 : vector<4x64xf32>
    %c2_72 = arith.constant 2 : index
    %c0_73 = arith.constant 0 : index
    %c0_74 = arith.constant 0 : index
    %84 = vector.load %arg9[%c2_72, %c0_73, %c0_74] : memref<3x4x8xbf16, #tpu.memory_space<vmem>>, vector<1x4x8xbf16>
    %85 = vector.shape_cast %84 : vector<1x4x8xbf16> to vector<4x8xbf16>
    %cst_75 = arith.constant dense<0.000000e+00> : vector<4x64xf32>
    %86 = tpu.matmul %85, %67, %cst_75 {dimension_numbers = #tpu.dot_dimension_numbers<[1], [0], [0], [1], [0, 0, 1, 1], [], []>} : vector<4x8xbf16>, vector<8x64xbf16>, vector<4x64xf32> -> vector<4x64xf32>
    %87 = arith.truncf %86 : vector<4x64xf32> to vector<4x64xbf16>
    %c2_76 = arith.constant 2 : index
    %c0_77 = arith.constant 0 : index
    %c0_78 = arith.constant 0 : index
    %88 = vector.load %arg8[%c2_76, %c0_77, %c0_78] : memref<3x64x64xbf16, #tpu.memory_space<vmem>>, vector<1x64x64xbf16>
    %89 = vector.shape_cast %88 : vector<1x64x64xbf16> to vector<64x64xbf16>
    %cst_79 = arith.constant dense<0.000000e+00> : vector<4x64xf32>
    %90 = tpu.matmul %87, %89, %cst_79 {dimension_numbers = #tpu.dot_dimension_numbers<[1], [0], [0], [1], [0, 0, 1, 1], [], []>} : vector<4x64xbf16>, vector<64x64xbf16>, vector<4x64xf32> -> vector<4x64xf32>
    %91 = arith.addf %83, %90 : vector<4x64xf32>
    %c0_80 = arith.constant 0 : index
    %c0_81 = arith.constant 0 : index
    %92 = vector.load %arg10[%c0_80, %c0_81] : memref<1x64xf32, #tpu.memory_space<vmem>>, vector<1x64xf32>
    %93 = vector.broadcast %92 : vector<1x64xf32> to vector<4x64xf32>
    %94 = arith.addf %91, %93 : vector<4x64xf32>
    %95 = arith.negf %94 : vector<4x64xf32>
    %96 = math.exp %95 : vector<4x64xf32>
    %cst_82 = arith.constant 1.000000e+00 : f32
    %97 = vector.broadcast %cst_82 : f32 to vector<4x64xf32>
    %98 = arith.addf %97, %96 : vector<4x64xf32>
    %99 = arith.divf %97, %98 : vector<4x64xf32>
    %100 = arith.mulf %94, %99 : vector<4x64xf32>
    %101 = arith.truncf %100 : vector<4x64xf32> to vector<4x64xbf16>
    %c0_83 = arith.constant 0 : index
    %c0_84 = arith.constant 0 : index
    %102 = vector.load %arg13[%c0_83, %c0_84] : memref<4x64xbf16, #tpu.memory_space<vmem>>, vector<4x64xbf16>
    tpu.vector_store %arg13[%c0_83, %c0_84], %101 {strides = array<i32>} : memref<4x64xbf16, #tpu.memory_space<vmem>>, vector<4x64xbf16>,
    return
  }
  func.func @transform_0(%arg0: i32) -> (i32, i32) {
    %c0_i32 = arith.constant 0 : i32
    %c0_i32_0 = arith.constant 0 : i32
    return %arg0, %c0_i32 : i32, i32
  }
  func.func @transform_1(%arg0: i32) -> (i32, i32, i32) {
    %c0_i32 = arith.constant 0 : i32
    %c0_i32_0 = arith.constant 0 : i32
    %c0_i32_1 = arith.constant 0 : i32
    %c0_i32_2 = arith.constant 0 : i32
    return %c0_i32, %c0_i32_0, %c0_i32_1 : i32, i32, i32
  }
  func.func @transform_2(%arg0: i32) -> (i32, i32, i32) {
    %c0_i32 = arith.constant 0 : i32
    %c0_i32_0 = arith.constant 0 : i32
    %c0_i32_1 = arith.constant 0 : i32
    %c0_i32_2 = arith.constant 0 : i32
    return %c0_i32, %c0_i32_0, %c0_i32_1 : i32, i32, i32
  }
  func.func @transform_3(%arg0: i32) -> (i32, i32) {
    %c0_i32 = arith.constant 0 : i32
    %c0_i32_0 = arith.constant 0 : i32
    %c0_i32_1 = arith.constant 0 : i32
    return %c0_i32, %c0_i32_0 : i32, i32
  }
  func.func @transform_4(%arg0: i32) -> (i32, i32, i32) {
    %c0_i32 = arith.constant 0 : i32
    %c0_i32_0 = arith.constant 0 : i32
    %c0_i32_1 = arith.constant 0 : i32
    %c0_i32_2 = arith.constant 0 : i32
    return %c0_i32, %c0_i32_0, %c0_i32_1 : i32, i32, i32
  }
  func.func @transform_5(%arg0: i32) -> (i32, i32, i32) {
    %c0_i32 = arith.constant 0 : i32
    %c0_i32_0 = arith.constant 0 : i32
    %c0_i32_1 = arith.constant 0 : i32
    %c0_i32_2 = arith.constant 0 : i32
    return %c0_i32, %c0_i32_0, %c0_i32_1 : i32, i32, i32
  }
  func.func @transform_6(%arg0: i32) -> (i32, i32) {
    %c0_i32 = arith.constant 0 : i32
    %c0_i32_0 = arith.constant 0 : i32
    %c0_i32_1 = arith.constant 0 : i32
    return %c0_i32, %c0_i32_0 : i32, i32
  }
  func.func @transform_7(%arg0: i32) -> (i32, i32, i32) {
    %c0_i32 = arith.constant 0 : i32
    %c0_i32_0 = arith.constant 0 : i32
    %c0_i32_1 = arith.constant 0 : i32
    %c0_i32_2 = arith.constant 0 : i32
    return %c0_i32, %c0_i32_0, %c0_i32_1 : i32, i32, i32
  }
  func.func @transform_8(%arg0: i32) -> (i32, i32, i32) {
    %c0_i32 = arith.constant 0 : i32
    %c0_i32_0 = arith.constant 0 : i32
    %c0_i32_1 = arith.constant 0 : i32
    %c0_i32_2 = arith.constant 0 : i32
    return %c0_i32, %c0_i32_0, %c0_i32_1 : i32, i32, i32
  }
  func.func @transform_9(%arg0: i32) -> (i32, i32) {
    %c0_i32 = arith.constant 0 : i32
    %c0_i32_0 = arith.constant 0 : i32
    %c0_i32_1 = arith.constant 0 : i32
    return %c0_i32, %c0_i32_0 : i32, i32
  }
  func.func @transform_10(%arg0: i32) -> (i32, i32) {
    %c0_i32 = arith.constant 0 : i32
    %c0_i32_0 = arith.constant 0 : i32
    return %arg0, %c0_i32 : i32, i32
  }
  func.func @transform_11(%arg0: i32) -> (i32, i32) {
    %c0_i32 = arith.constant 0 : i32
    %c0_i32_0 = arith.constant 0 : i32
    return %arg0, %c0_i32 : i32, i32
  }
  func.func @transform_12(%arg0: i32) -> (i32, i32) {
    %c0_i32 = arith.constant 0 : i32
    %c0_i32_0 = arith.constant 0 : i32
    return %arg0, %c0_i32 : i32, i32
  }
}

</mosaic_0001>

<bundles_post_ra>
// kernel: _fused_backbone_call.1
= control target key start
LH: loop header
LB: loop body
LE: loop exit
PB: predicated region body
PF: predicated region fallthrough
CT: control target
= control target key end

     0   :  { %18 = vsyncpa [#allocation3], 0  ;;  %s2331_s0 = inlined_call_operand.hbm [shape: bf16[32,64], index: 0, kind: input, shape index: {}]   ;;  %s2332_s1 = inlined_call_operand.hbm [shape: bf16[3,64,64], index: 1, kind: input, shape index: {}]   ;;  %s2333_s2 = inlined_call_operand.hbm [shape: bf16[3,16,32], index: 2, kind: input, shape index: {}]   ;;  %s2334_s3 = inlined_call_operand.hbm [shape: f32[1,64], index: 3, kind: input, shape index: {}]   ;;  %s2335_s4 = inlined_call_operand.hbm [shape: bf16[3,64,64], index: 4, kind: input, shape index: {}]   ;;  %s2336_s5 = inlined_call_operand.vmem [shape: bf16[3,8,16], index: 5, kind: input, shape index: {}]   ;;  %s2337_s6 = inlined_call_operand.vmem [shape: f32[1,64], index: 6, kind: input, shape index: {}]   ;;  %s2338_s7 = inlined_call_operand.hbm [shape: bf16[3,64,64], index: 7, kind: input, shape index: {}]   ;;  %s2339_s8 = inlined_call_operand.vmem [shape: bf16[3,4,8], index: 8, kind: input, shape index: {}]   ;;  %s2340_s9 = inlined_call_operand.vmem [shape: f32[1,64], index: 9, kind: input, shape index: {}]   ;;  %s2341_s10 = inlined_call_operand.hbm [shape: bf16[16,64], index: 10, kind: output, shape index: {0}]   ;;  %s2342_s11 = inlined_call_operand.hbm [shape: bf16[8,64], index: 11, kind: output, shape index: {1}]   ;;  %s2343_s12 = inlined_call_operand.hbm [shape: bf16[4,64], index: 12, kind: output, shape index: {2}]  }
   0x1   :  { %19 = vsyncpa [#allocation6], 0 }
   0x2   :  { %20 = vsyncpa [#allocation9], 0 }
   0x3   :  { %21 = vsyncpa [#allocation12], 0 }
   0x4   :  { %22 = vsyncpa [#allocation4], 0 }
   0x5   :  { %23 = vsyncpa [#allocation15], 0  ;;  %s1969_s21 = smov [#allocation5]   ;;  %s1970_s23 = smov [#allocation8]  }
   0x6   :  { %s41_s22 = sshll.u32 %s1969_s21, 4  ;;  %s66_s24 = sshll.u32 %s1970_s23, 4  ;;  %s42_s22 = int_to_ptr.vmem [resolvable:$true] %s41_s22  ;;  %s2047_s24 = int_to_ptr.vmem [resolvable:$true] %s66_s24 }
   0x7   :  { %s1759_s27 = scalar_lea.hbm %s2332_s1, 1536 }
   0x8   :  { %p1760_p0 = scmp.ne.s32.totalorder %s2332_s1, %s1759_s27  ;;  %p1763_p1 = scmp.lt.u32.totalorder %s1759_s27, %s2332_s1 }
   0xa   :  { %p1765_p2 = pnand %p1763_p1, %p1760_p0 }
   0xc   :  { %1768 = shalt.err (!%p1765_p2)
}
   0xd   :  { %s1769_s14 = scalar_lea.vmem %s42_s22, 1536  ;;  %p1774_p4 = scmp.lt.s32.totalorder %s42_s22, %s42_s22 }
   0xe   :  { %p1770_p3 = scmp.ne.s32.totalorder %s42_s22, %s1769_s14  ;;  %p1775_p5 = scmp.lt.s32.totalorder %s1769_s14, %s1769_s14 }
  0x10   :  { %p1776_p6 = por %p1775_p5, %p1774_p4 }
  0x12   :  { %p1777_p7 = pnand %p1776_p6, %p1770_p3 }
  0x14   :  { %1780 = shalt.err (!%p1777_p7)
}
  0x15   :  { %s1971_s15 = smov 64   ;;  %s1972_s16 = smov 4  }
  0x16   :  { %47 = dma.hbm_to_vmem [thread:$0]  %s2332_s1, 1536, %s42_s22, [#allocation6], %s1971_s15, %s1971_s15, %s1972_s16  }
  0x17   :  { %s1781_s21 = scalar_lea.hbm %s2334_s3, 16 }
  0x18   :  { %p1782_p8 = scmp.ne.s32.totalorder %s2334_s3, %s1781_s21  ;;  %p1785_p9 = scmp.lt.u32.totalorder %s1781_s21, %s2334_s3 }
  0x1a   :  { %p1787_p10 = pnand %p1785_p9, %p1782_p8 }
  0x1c   :  { %1790 = shalt.err (!%p1787_p10)
}
  0x1d   :  { %s1791_s28 = scalar_lea.vmem %s2047_s24, 16  ;;  %s1795_s1 = scalar_lea.vmem %s2047_s24, 32 }
  0x1e   :  { %p1792_p11 = scmp.ne.s32.totalorder %s2047_s24, %s1791_s28  ;;  %p1796_p12 = scmp.lt.s32.totalorder %s2047_s24, %s2047_s24 }
  0x1f   :  { %p1797_p13 = scmp.lt.s32.totalorder %s1795_s1, %s1791_s28 }
  0x21   :  { %p1798_p0 = por %p1797_p13, %p1796_p12 }
  0x23   :  { %p1799_p1 = pnand %p1798_p0, %p1792_p11 }
  0x25   :  { %1802 = shalt.err (!%p1799_p1)
}
  0x26   :  { %69 = dma.hbm_to_vmem [thread:$0]  %s2334_s3, 16, %s2047_s24, [#allocation9]  }
  0x27   :  { %s1973_s30 = smov [#allocation2]   ;;  %s1974_s14 = smov [#allocation7]  }
  0x28   :  { %s29_s13 = sshll.u32 %s1973_s30, 4  ;;  %s53_s17 = sshll.u32 %s1974_s14, 4  ;;  %s30_s13 = int_to_ptr.vmem [resolvable:$true] %s29_s13  ;;  %s2082_s17 = int_to_ptr.vmem [resolvable:$true] %s53_s17 }
  0x29   :  { %s1803_s20 = scalar_lea.hbm %s2331_s0, 256 }
  0x2a   :  { %p1804_p2 = scmp.ne.s32.totalorder %s2331_s0, %s1803_s20  ;;  %p1807_p3 = scmp.lt.u32.totalorder %s1803_s20, %s2331_s0 }
  0x2c   :  { %p1809_p4 = pnand %p1807_p3, %p1804_p2 }
  0x2e   :  { %1812 = shalt.err (!%p1809_p4)
}
  0x2f   :  { %s1813_s3 = scalar_lea.vmem %s30_s13, 256  ;;  %p1818_p6 = scmp.lt.s32.totalorder %s30_s13, %s30_s13 }
  0x30   :  { %p1814_p5 = scmp.ne.s32.totalorder %s30_s13, %s1813_s3  ;;  %p1819_p7 = scmp.lt.s32.totalorder %s1813_s3, %s1813_s3 }
  0x32   :  { %p1820_p8 = por %p1819_p7, %p1818_p6 }
  0x34   :  { %p1821_p9 = pnand %p1820_p8, %p1814_p5 }
  0x36   :  { %1824 = shalt.err (!%p1821_p9)
}
  0x37   :  { %35 = dma.hbm_to_vmem [thread:$0]  %s2331_s0, 256, %s30_s13, [#allocation3], %s1971_s15, %s1971_s15, %s1972_s16  }
  0x38   :  { %s1825_s22 = scalar_lea.hbm %s2333_s2, 384 }
  0x39   :  { %p1826_p10 = scmp.ne.s32.totalorder %s2333_s2, %s1825_s22  ;;  %p1829_p11 = scmp.lt.u32.totalorder %s1825_s22, %s2333_s2 }
  0x3b   :  { %p1831_p12 = pnand %p1829_p11, %p1826_p10 }
  0x3d   :  { %1834 = shalt.err (!%p1831_p12)
}
  0x3e   :  { %s1835_s19 = scalar_lea.vmem %s2082_s17, 384  ;;  %p1840_p0 = scmp.lt.s32.totalorder %s2082_s17, %s2082_s17 }
  0x3f   :  { %p1836_p13 = scmp.ne.s32.totalorder %s2082_s17, %s1835_s19  ;;  %p1841_p1 = scmp.lt.s32.totalorder %s1835_s19, %s1835_s19 }
  0x41   :  { %p1842_p2 = por %p1841_p1, %p1840_p0 }
  0x43   :  { %p1843_p3 = pnand %p1842_p2, %p1836_p13 }
  0x45   :  { %1846 = shalt.err (!%p1843_p3)
}
  0x46   :  { %59 = dma.hbm_to_vmem [thread:$0]  %s2333_s2, 384, %s2082_s17, [#allocation6], %s1971_s15, %s1971_s15, %s1972_s16  }
  0x47   :  { %s1975_s20 = smov [#allocation10]   ;;  %s1976_s23 = smov [#allocation11]  }
  0x48   :  { %s75_s21 = sshll.u32 %s1975_s20, 4  ;;  %s91_s25 = sshll.u32 %s1976_s23, 4  ;;  %s76_s21 = int_to_ptr.vmem [resolvable:$true] %s75_s21  ;;  %s2119_s25 = int_to_ptr.vmem [resolvable:$true] %s91_s25 }
  0x49   :  { %s1847_s24 = scalar_lea.hbm %s2335_s4, 1536 }
  0x4a   :  { %p1848_p4 = scmp.ne.s32.totalorder %s2335_s4, %s1847_s24  ;;  %p1851_p5 = scmp.lt.u32.totalorder %s1847_s24, %s2335_s4 }
  0x4c   :  { %p1853_p6 = pnand %p1851_p5, %p1848_p4 }
  0x4e   :  { %1856 = shalt.err (!%p1853_p6)
}
  0x4f   :  { %s1857_s2 = scalar_lea.vmem %s76_s21, 1536  ;;  %p1862_p8 = scmp.lt.s32.totalorder %s76_s21, %s76_s21 }
  0x50   :  { %p1858_p7 = scmp.ne.s32.totalorder %s76_s21, %s1857_s2  ;;  %p1863_p9 = scmp.lt.s32.totalorder %s1857_s2, %s1857_s2 }
  0x52   :  { %p1864_p10 = por %p1863_p9, %p1862_p8 }
  0x54   :  { %p1865_p11 = pnand %p1864_p10, %p1858_p7 }
  0x56   :  { %1868 = shalt.err (!%p1865_p11)
}
  0x57   :  { %81 = dma.hbm_to_vmem [thread:$0]  %s2335_s4, 1536, %s76_s21, [#allocation9], %s1971_s15, %s1971_s15, %s1972_s16  }
  0x58   :  { %s1869_s18 = scalar_lea.hbm %s2338_s7, 1536 }
  0x59   :  { %p1870_p12 = scmp.ne.s32.totalorder %s2338_s7, %s1869_s18  ;;  %p1873_p13 = scmp.lt.u32.totalorder %s1869_s18, %s2338_s7 }
  0x5b   :  { %p1875_p0 = pnand %p1873_p13, %p1870_p12 }
  0x5d   :  { %1878 = shalt.err (!%p1875_p0)
}
  0x5e   :  { %s1879_s23 = scalar_lea.vmem %s2119_s25, 1536  ;;  %p1884_p2 = scmp.lt.s32.totalorder %s2119_s25, %s2119_s25 }
  0x5f   :  { %p1880_p1 = scmp.ne.s32.totalorder %s2119_s25, %s1879_s23  ;;  %p1885_p3 = scmp.lt.s32.totalorder %s1879_s23, %s1879_s23 }
  0x61   :  { %p1886_p4 = por %p1885_p3, %p1884_p2 }
  0x63   :  { %p1887_p5 = pnand %p1886_p4, %p1880_p1 }
  0x65   :  { %1890 = shalt.err (!%p1887_p5)
}
  0x66   :  { %97 = dma.hbm_to_vmem [thread:$0]  %s2338_s7, 1536, %s2119_s25, [#allocation12], %s1971_s15, %s1971_s15, %s1972_s16  }
  0x67   :  { %1957 = dma.done.wait [#allocation3], 256  }
  0x68   :  { %1958 = vsyncadd [#allocation3], 4294967040 }
  0x69   :  { %1959 = dma.done.wait [#allocation6], 1920  }
  0x6a   :  { %1960 = vsyncadd [#allocation6], 4294965376 }
  0x6b   :  { %1961 = dma.done.wait [#allocation9], 1552  }
  0x6c   :  { %1962 = vsyncadd [#allocation9], 4294965744 }
  0x6d   :  { %1963 = dma.done.wait [#allocation12], 1536  }
  0x6e   :  { %1964 = vsyncadd [#allocation12], 4294965760  ;;  %v1977_v0 = vmov 0.0   ;;  %vm1978_vm0 = vmmov 0   ;;  %v1702_v1 = vld [vmem:[#allocation2] sm:$0xff]   ;;  %v1703_v2 = vld [vmem:[#allocation2 + $0x8] sm:$0xff]  }
  0x6f   :  { %1521 = vmatprep.subr.bf16.mxu0 %v1977_v0  ;;  %1529 = vmatprep.subr.bf16.mxu1 %v1977_v0  ;;  %v1704_v3 = vld [vmem:[#allocation7] sm:$0xff]   ;;  %v1705_v4 = vld [vmem:[#allocation7 + $0x8] sm:$0xff]   ;;  %vm144_vm1 = vcmask 261120   ;;  %v1710_v9 = vld [vmem:[#allocation5 + $0x30] sm:$0xff]   ;;  %vm284_vm2 = vcmask 523264   ;;  %vm560_vm3 = vcmask 519168  }
  0x70   :  { %1525 = vmatprep.mubr.msk.bf16.mxu0 %vm1978_vm0, %v1977_v0  ;;  %1533 = vmatprep.mubr.msk.bf16.mxu1 %vm1978_vm0, %v1977_v0  ;;  %v1706_v5 = vld [vmem:[#allocation5 + $0x20] sm:$0xff]   ;;  %v1708_v7 = vld [vmem:[#allocation5 + $0x28] sm:$0xff]   ;;  %v1711_v10 = vld [vmem:[#allocation5 + $0x10] sm:$0xff]   ;;  %vm564_vm4 = vcmask 130048   ;;  %vm951_vm5 = vcmask 1043456   ;;  %vm947_vm6 = vcmask 64512  }
  0x71   :  { %1522 = vmatpush3.bf16.msra.mxu0 %v1702_v1  ;;  %1530 = vmatpush3.bf16.msra.mxu1 %v1702_v1  ;;  %v1707_v6 = vld [vmem:[#allocation5] sm:$0xff]   ;;  %v1709_v8 = vld [vmem:[#allocation5 + $0x8] sm:$0xff]   ;;  %v1712_v11 = vld [vmem:[#allocation5 + $0x38] sm:$0xff]   ;;  %s1980_s14 = smov [#allocation13]  }
  0x72   :  { %1523 = vmatprep.subr.bf16.mxu0 %v1977_v0  ;;  %1531 = vmatprep.subr.bf16.mxu1 %v1977_v0  ;;  %v1713_v12 = vld [vmem:[#allocation5 + $0x18] sm:$0xff]   ;;  %v1715_v23 = vld [vmem:[#allocation5 + $0x40] sm:$0xff]   ;;  %v1714_v24 = vld [vmem:[#allocation7 + $0x10] sm:$0xff]   ;;  %s1339_s18 = sshll.u32 %s1980_s14, 4  ;;  %s2282_s18 = int_to_ptr.vmem [resolvable:$true] %s1339_s18 }
  0x73   :  { %v1716_v25 = vld [vmem:[#allocation5 + $0x48] sm:$0xff]   ;;  %v1717_v26 = vld [vmem:[#allocation5 + $0x50] sm:$0xff]   ;;  %v1718_v27 = vld [vmem:[#allocation5 + $0x58] sm:$0xff]  }
  0x74   :  { %v1721_v43 = vld [vmem:[#allocation10 + $0x20] sm:$0xff]   ;;  %v1723_v44 = vld [vmem:[#allocation10 + $0x28] sm:$0xff]   ;;  %v1404_v46 = vld [vmem:[#allocation8] ss:$0 sm:$0xff] }
  0x75   :  { %1524 = vmatpush3.bf16.msra.mxu0 %v1703_v2  ;;  %1532 = vmatpush3.bf16.msra.mxu1 %v1703_v2 }
  0x76   :  { %1537 = vmatprep.subr.bf16.mxu0 %v1977_v0  ;;  %1549 = vmatprep.subr.bf16.mxu1 %v1977_v0 }
  0x78   :  { %1526 = vmatmul.mubr.msk.bf16.vlgmr.msra.gmra.mrb[0].mxu0 %vm144_vm1, %v1704_v3  ;;  %1534 = vmatmul.mubr.msk.bf16.vlgmr.msra.gmra.mrb[0].mxu1 %vm144_vm1, %v1705_v4  ;;  %v563_v4 = vld [vmem:[%s2336_s5] sm:$0xf] }
  0x79   :  { %1538 = vmatpush3.bf16.msra.mxu0 %v1706_v5  ;;  %1550 = vmatpush3.bf16.msra.mxu1 %v1707_v6  ;;  %v1410_v5 = vld [vmem:[%s2336_s5 + $0x4] sm:$0xf]  ;;  %v1719_v6 = vld [vmem:[#allocation10] sm:$0xff]  }
  0x7a   :  { %1539 = vmatprep.subr.bf16.mxu0 %v1977_v0  ;;  %1551 = vmatprep.subr.bf16.mxu1 %v1977_v0 }
  0x7b   :  { %1545 = vmatprep.mubr.msk.bf16.mxu0 %vm1978_vm0, %v1977_v0  ;;  %1557 = vmatprep.mubr.msk.bf16.mxu1 %vm1978_vm0, %v1977_v0 }
  0x7d   :  { %1540 = vmatpush3.bf16.msra.mxu0 %v1708_v7  ;;  %1552 = vmatpush3.bf16.msra.mxu1 %v1709_v8  ;;  %v1720_v7 = vld [vmem:[#allocation10 + $0x8] sm:$0xff]   ;;  %v1722_v8 = vld [vmem:[#allocation10 + $0x10] sm:$0xff]  }
  0x7e   :  { %1541 = vmatprep.subr.bf16.mxu0 %v1977_v0  ;;  %1553 = vmatprep.subr.bf16.mxu1 %v1977_v0 }
  0x81   :  { %1542 = vmatpush3.bf16.msra.mxu0 %v1710_v9  ;;  %1554 = vmatpush3.bf16.msra.mxu1 %v1711_v10  ;;  %v1724_v9 = vld [vmem:[#allocation10 + $0x18] sm:$0xff]   ;;  %v1725_v10 = vld [vmem:[#allocation10 + $0x30] sm:$0xff]  }
  0x82   :  { %1543 = vmatprep.subr.bf16.mxu0 %v1977_v0  ;;  %1555 = vmatprep.subr.bf16.mxu1 %v1977_v0 }
  0x85   :  { %1544 = vmatpush3.bf16.msra.mxu0 %v1712_v11  ;;  %1556 = vmatpush3.bf16.msra.mxu1 %v1713_v12  ;;  %v1726_v11 = vld [vmem:[#allocation10 + $0x38] sm:$0xff]  }
  0x86   :  { %1561 = vmatprep.subr.bf16.mxu0 %v1977_v0  ;;  %1569 = vmatprep.subr.bf16.mxu1 %v1977_v0 }
 0x14b   :  { %v182_v13 = vpop.f32.mrb[0].mxu0  ;;  %v243_v14 = vpop.f32.mrb[0].mxu1 }
 0x14c   :  { %v1527_v15 = vpop.f32.mrb[1].mxu0  ;;  %v1535_v16 = vpop.f32.mrb[1].mxu1 }
 0x14d   :  { %v185_v17 = vpop.f32.mrb[2].mxu0  ;;  %v246_v18 = vpop.f32.mrb[2].mxu1 }
 0x14e   :  { %v189_v19 = vpack.c.bf16 %v185_v17, %v182_v13  ;;  %v250_v20 = vpack.c.bf16 %v246_v18, %v243_v14  ;;  %v1536_v21 = vpop.f32.mrb[3].mxu1  ;;  %v1528_v22 = vpop.f32.mrb[3].mxu0 }
 0x14f   :  { %v1422_v22 = vld [vmem:[%s2336_s5 + $0x8] sm:$0xf] }
 0x150   :  { %1546 = vmatmul.mubr.msk.bf16.vlgmr.msra.gmra.mrb[4].mxu0 %vm284_vm2, %v250_v20  ;;  %1558 = vmatmul.mubr.msk.bf16.vlgmr.msra.gmra.mrb[4].mxu1 %vm284_vm2, %v189_v19 }
 0x151   :  { %1562 = vmatpush3.bf16.msra.mxu0 %v1702_v1  ;;  %1565 = vmatprep.mubr.msk.bf16.mxu0 %vm1978_vm0, %v1977_v0 }
 0x152   :  { %1563 = vmatprep.subr.bf16.mxu0 %v1977_v0  ;;  %1570 = vmatpush3.bf16.msra.mxu1 %v1715_v23  ;;  %v1727_v23 = vld [vmem:[#allocation10 + $0x40] sm:$0xff]  }
 0x153   :  { %1571 = vmatprep.subr.bf16.mxu1 %v1977_v0  ;;  %1577 = vmatprep.mubr.msk.bf16.mxu1 %vm1978_vm0, %v1977_v0 }
 0x155   :  { %1564 = vmatpush3.bf16.msra.mxu0 %v1703_v2 }
 0x156   :  { %1581 = vmatprep.subr.bf16.mxu0 %v1977_v0  ;;  %1572 = vmatpush3.bf16.msra.mxu1 %v1716_v25  ;;  %v1729_v25 = vld [vmem:[#allocation10 + $0x50] sm:$0xff]  }
 0x157   :  { %1573 = vmatprep.subr.bf16.mxu1 %v1977_v0 }
 0x158   :  { %1566 = vmatmul.mubr.msk.bf16.vlgmr.msra.gmra.mrb[8].mxu0 %vm144_vm1, %v1714_v24  ;;  %v1728_v24 = vld [vmem:[#allocation10 + $0x48] sm:$0xff]  }
 0x159   :  { %1583 = vmatprep.mubr.msk.bf16.mxu0 %vm1978_vm0, %v1977_v0 }
 0x15a   :  { %1574 = vmatpush3.bf16.msra.mxu1 %v1717_v26  ;;  %v1730_v26 = vld [vmem:[#allocation10 + $0x58] sm:$0xff]  }
 0x15b   :  { %1575 = vmatprep.subr.bf16.mxu1 %v1977_v0 }
 0x15e   :  { %1576 = vmatpush3.bf16.msra.mxu1 %v1718_v27 }
 0x15f   :  { %1593 = vmatprep.subr.bf16.mxu1 %v1977_v0 }
 0x223   :  { %v322_v28 = vpop.f32.mrb[4].mxu0  ;;  %v390_v29 = vpop.f32.mrb[4].mxu1 }
 0x224   :  { %v391_v30 = vadd.f32 %v390_v29, %v322_v28  ;;  %v1547_v31 = vpop.f32.mrb[5].mxu0  ;;  %v1559_v32 = vpop.f32.mrb[5].mxu1 }
 0x225   :  { %v325_v33 = vpop.f32.mrb[6].mxu0  ;;  %v393_v34 = vpop.f32.mrb[6].mxu1 }
 0x226   :  { %v394_v35 = vadd.f32 %v393_v34, %v325_v33  ;;  %v1548_v36 = vpop.f32.mrb[7].mxu0  ;;  %v1560_v37 = vpop.f32.mrb[7].mxu1 }
 0x22b   :  { %v442_v38 = vpop.f32.mrb[8].mxu0 }
 0x22c   :  { %v1567_v39 = vpop.f32.mrb[9].mxu0 }
 0x22d   :  { %v445_v40 = vpop.f32.mrb[10].mxu0 }
 0x22e   :  { %v449_v41 = vpack.c.bf16 %v445_v40, %v442_v38  ;;  %v1568_v42 = vpop.f32.mrb[11].mxu0 }
 0x22f   :  { %v1735_v42 = vld [vmem:[#allocation11 + $0x28] sm:$0xff]  }
 0x230   :  { %1578 = vmatmul.mubr.msk.bf16.vlgmr.msra.gmra.mrb[8].mxu1 %vm284_vm2, %v449_v41  ;;  %v1733_v41 = vld [vmem:[#allocation11 + $0x20] sm:$0xff]  }
 0x231   :  { %1601 = vmatprep.mubr.msk.bf16.mxu1 %vm1978_vm0, %v1977_v0  ;;  %1594 = vmatpush3.bf16.msra.mxu1 %v1721_v43 }
 0x232   :  { %1595 = vmatprep.subr.bf16.mxu1 %v1977_v0 }
 0x235   :  { %1596 = vmatpush3.bf16.msra.mxu1 %v1723_v44  ;;  %v1429_v44 = vld [vmem:[%s2337_s6] ss:$0 sm:$0xff] }
 0x236   :  { %1597 = vmatprep.subr.bf16.mxu1 %v1977_v0 }
 0x239   :  { %1598 = vmatpush3.bf16.msra.mxu1 %v1725_v10 }
 0x23a   :  { %1599 = vmatprep.subr.bf16.mxu1 %v1977_v0 }
 0x23d   :  { %1600 = vmatpush3.bf16.msra.mxu1 %v1726_v11 }
 0x23e   :  { %1617 = vmatprep.subr.bf16.mxu1 %v1977_v0 }
 0x303   :  { %v520_v45 = vpop.f32.mrb[8].mxu1 }
 0x304   :  { %v527_v47 = vadd.f32 %v520_v45, %v391_v30  ;;  %v1579_v48 = vpop.f32.mrb[9].mxu1 }
 0x305   :  { %v523_v49 = vpop.f32.mrb[10].mxu1 }
 0x306   :  { %v536_v50 = vadd.f32 %v1404_v46, %v527_v47  ;;  %v528_v51 = vadd.f32 %v523_v49, %v394_v35  ;;  %v1580_v52 = vpop.f32.mrb[11].mxu1 }
 0x308   :  { %v1405_v53 = vmul.f32 -1.442695, %v536_v50  ;;  %v537_v54 = vadd.f32 %v1404_v46, %v528_v51 }
 0x30a   :  { %1743 = vpow2.f32 %v1405_v53  ;;  %v1406_v55 = vmul.f32 -1.442695, %v537_v54 }
 0x30c   :  { %1745 = vpow2.f32 %v1406_v55 }
 0x314   :  { %v1744_v56 = vpop.eup %1743 }
 0x315   :  { %v544_v57 = vadd.f32 1.0, %v1744_v56 }
 0x316   :  { %v1746_v58 = vpop.eup %1745 }
 0x317   :  { %1747 = vrcp.f32 %v544_v57  ;;  %v545_v59 = vadd.f32 1.0, %v1746_v58  ;;  %v946_v57 = vld [vmem:[%s2339_s8] sm:$0x3]  ;;  %v1432_v58 = vld [vmem:[%s2339_s8 + $0x2] sm:$0x3] }
 0x319   :  { %1749 = vrcp.f32 %v545_v59  ;;  %v1731_v59 = vld [vmem:[#allocation11] sm:$0xff]  }
 0x321   :  { %v1748_v60 = vpop.eup %1747 }
 0x322   :  { %v550_v61 = vmul.f32 %v1748_v60, %v536_v50  ;;  %v1732_v60 = vld [vmem:[#allocation11 + $0x8] sm:$0xff]  }
 0x323   :  { %v1750_v62 = vpop.eup %1749 }
 0x324   :  { %v1453_v63 = vpack.c.bf16 %v550_v61, %v550_v61  ;;  %v551_v1 = vmul.f32 %v1750_v62, %v537_v54  ;;  %v1736_v62 = vld [vmem:[#allocation11 + $0x18] sm:$0xff]  }
 0x326   :  { %v552_v2 = vpack.c.bf16 %v551_v1, %v550_v61  ;;  %v1454_v3 = vpack.c.bf16 %v551_v1, %v551_v1  ;;  %561 = vst.msk [vmem:[#allocation13] sm:$0xf] %vm560_vm3, %v1453_v63  ;;  %v1734_v61 = vld [vmem:[#allocation11 + $0x10] sm:$0xff]   ;;  %v1738_v1 = vld [vmem:[#allocation11 + $0x38] sm:$0xff]  }
 0x327   :  { %v1737_v63 = vld [vmem:[#allocation11 + $0x30] sm:$0xff]  }
 0x328   :  { %1582 = vmatpush3.bf16.msra.mxu0 %v552_v2  ;;  %562 = vst.msk [vmem:[#allocation13 + $0x4] sm:$0xf] %vm560_vm3, %v1454_v3 }
 0x329   :  { %1587 = vmatprep.subr.bf16.mxu0 %v1977_v0 }
 0x32b   :  { %1584 = vmatmul.mubr.msk.bf16.vlgmr.msra.gmra.mrb[12].mxu0 %vm564_vm4, %v563_v4 }
 0x32c   :  { %1588 = vmatpush3.bf16.msra.mxu0 %v552_v2  ;;  %1589 = vmatprep.mubr.msk.bf16.mxu0 %vm1978_vm0, %v1977_v0 }
 0x32d   :  { %1605 = vmatprep.subr.bf16.mxu0 %v1977_v0 }
 0x333   :  { %1590 = vmatmul.mubr.msk.bf16.vlgmr.msra.gmra.mrb[16].mxu0 %vm564_vm4, %v1410_v5 }
 0x334   :  { %1606 = vmatpush3.bf16.msra.mxu0 %v1719_v6  ;;  %1613 = vmatprep.mubr.msk.bf16.mxu0 %vm1978_vm0, %v1977_v0 }
 0x335   :  { %1607 = vmatprep.subr.bf16.mxu0 %v1977_v0 }
 0x338   :  { %1608 = vmatpush3.bf16.msra.mxu0 %v1720_v7 }
 0x339   :  { %1609 = vmatprep.subr.bf16.mxu0 %v1977_v0 }
 0x33c   :  { %1610 = vmatpush3.bf16.msra.mxu0 %v1722_v8 }
 0x33d   :  { %1611 = vmatprep.subr.bf16.mxu0 %v1977_v0 }
 0x340   :  { %1612 = vmatpush3.bf16.msra.mxu0 %v1724_v9 }
 0x341   :  { %1623 = vmatprep.subr.bf16.mxu0 %v1977_v0 }
 0x3fe   :  { %v602_v12 = vpop.f32.mrb[12].mxu0 }
 0x3ff   :  { %v608_v13 = vpack.c.bf16 %v602_v12, %v602_v12  ;;  %v1585_v14 = vpop.f32.mrb[13].mxu0  ;;  %v1444_v12 = vld [vmem:[%s2339_s8 + $0x4] sm:$0x3]  ;;  %s1979_s8 = smov [#allocation14]  }
 0x400   :  { %v605_v15 = vpop.f32.mrb[14].mxu0  ;;  %v1740_v14 = vld [vmem:[#allocation11 + $0x48] sm:$0xff]   ;;  %s1352_s30 = sshll.u32 %s1979_s8, 4  ;;  %s1353_s30 = int_to_ptr.vmem [resolvable:$true] %s1352_s30 }
 0x401   :  { %v1586_v16 = vpop.f32.mrb[15].mxu0  ;;  %1614 = vmatmul.mubr.msk.bf16.vlgmr.msra.gmra.mrb[20].mxu0 %vm284_vm2, %v608_v13  ;;  %v1739_v13 = vld [vmem:[#allocation11 + $0x40] sm:$0xff]   ;;  %v1741_v15 = vld [vmem:[#allocation11 + $0x50] sm:$0xff]   ;;  %s1891_s19 = scalar_lea.vmem %s1353_s30, 64  ;;  %p1896_p7 = scmp.lt.s32.totalorder %s1353_s30, %s1353_s30 }
 0x402   :  { %1631 = vmatprep.mubr.msk.bf16.mxu0 %vm1978_vm0, %v1977_v0  ;;  %1624 = vmatpush3.bf16.msra.mxu0 %v1727_v23  ;;  %v1742_v16 = vld [vmem:[#allocation11 + $0x58] sm:$0xff]   ;;  %p1892_p6 = scmp.ne.s32.totalorder %s1353_s30, %s1891_s19  ;;  %p1897_p8 = scmp.lt.s32.totalorder %s1891_s19, %s1891_s19 }
 0x403   :  { %1625 = vmatprep.subr.bf16.mxu0 %v1977_v0 }
 0x404   :  { %p1898_p9 = por %p1897_p8, %p1896_p7 }
 0x406   :  { %v656_v17 = vpop.f32.mrb[16].mxu0  ;;  %1626 = vmatpush3.bf16.msra.mxu0 %v1728_v24  ;;  %p1899_p10 = pnand %p1898_p9, %p1892_p6 }
 0x407   :  { %v662_v18 = vpack.c.bf16 %v656_v17, %v656_v17  ;;  %v1591_v19 = vpop.f32.mrb[17].mxu0  ;;  %1627 = vmatprep.subr.bf16.mxu0 %v1977_v0 }
 0x408   :  { %v659_v20 = vpop.f32.mrb[18].mxu0 }
 0x409   :  { %v1592_v21 = vpop.f32.mrb[19].mxu0  ;;  %1602 = vmatmul.mubr.msk.bf16.vlgmr.msra.gmra.mrb[12].mxu1 %vm284_vm2, %v662_v18 }
 0x40a   :  { %1618 = vmatpush3.bf16.msra.mxu1 %v552_v2  ;;  %1619 = vmatprep.mubr.msk.bf16.mxu1 %vm1978_vm0, %v1977_v0 }
 0x40b   :  { %1635 = vmatprep.subr.bf16.mxu1 %v1977_v0  ;;  %1628 = vmatpush3.bf16.msra.mxu0 %v1729_v25 }
 0x40c   :  { %1629 = vmatprep.subr.bf16.mxu0 %v1977_v0 }
 0x40f   :  { %1630 = vmatpush3.bf16.msra.mxu0 %v1730_v26 }
 0x410   :  { %1647 = vmatprep.subr.bf16.mxu0 %v1977_v0 }
 0x411   :  { %1620 = vmatmul.mubr.msk.bf16.vlgmr.msra.gmra.mrb[16].mxu1 %vm564_vm4, %v1422_v22 }
 0x412   :  { %1637 = vmatprep.mubr.msk.bf16.mxu1 %vm1978_vm0, %v1977_v0 }
 0x4d4   :  { %v800_v27 = vpop.f32.mrb[20].mxu0 }
 0x4d5   :  { %v1615_v28 = vpop.f32.mrb[21].mxu0 }
 0x4d6   :  { %v803_v29 = vpop.f32.mrb[22].mxu0 }
 0x4d7   :  { %v1616_v30 = vpop.f32.mrb[23].mxu0 }
 0x4dc   :  { %v733_v31 = vpop.f32.mrb[12].mxu1 }
 0x4dd   :  { %v801_v32 = vadd.f32 %v800_v27, %v733_v31  ;;  %v1603_v33 = vpop.f32.mrb[13].mxu1 }
 0x4de   :  { %v736_v34 = vpop.f32.mrb[14].mxu1 }
 0x4df   :  { %v1604_v35 = vpop.f32.mrb[15].mxu1 }
 0x4e4   :  { %v845_v36 = vpop.f32.mrb[16].mxu1 }
 0x4e5   :  { %v851_v37 = vpack.c.bf16 %v845_v36, %v845_v36  ;;  %v1621_v38 = vpop.f32.mrb[17].mxu1 }
 0x4e6   :  { %v848_v39 = vpop.f32.mrb[18].mxu1 }
 0x4e7   :  { %v1622_v40 = vpop.f32.mrb[19].mxu1  ;;  %1632 = vmatmul.mubr.msk.bf16.vlgmr.msra.gmra.mrb[24].mxu0 %vm284_vm2, %v851_v37 }
 0x4e8   :  { %1655 = vmatprep.mubr.msk.bf16.mxu0 %vm1978_vm0, %v1977_v0  ;;  %1648 = vmatpush3.bf16.msra.mxu0 %v1733_v41 }
 0x4e9   :  { %1649 = vmatprep.subr.bf16.mxu0 %v1977_v0 }
 0x4ec   :  { %1650 = vmatpush3.bf16.msra.mxu0 %v1735_v42 }
 0x4ed   :  { %1651 = vmatprep.subr.bf16.mxu0 %v1977_v0 }
 0x4f0   :  { %1652 = vmatpush3.bf16.msra.mxu0 %v1737_v63 }
 0x4f1   :  { %1653 = vmatprep.subr.bf16.mxu0 %v1977_v0 }
 0x4f4   :  { %1654 = vmatpush3.bf16.msra.mxu0 %v1738_v1 }
 0x4f5   :  { %1671 = vmatprep.subr.bf16.mxu0 %v1977_v0 }
 0x5ba   :  { %v922_v43 = vpop.f32.mrb[24].mxu0 }
 0x5bb   :  { %v928_v45 = vadd.f32 %v922_v43, %v801_v32  ;;  %v1633_v46 = vpop.f32.mrb[25].mxu0 }
 0x5bc   :  { %v925_v47 = vpop.f32.mrb[26].mxu0 }
 0x5bd   :  { %v936_v48 = vadd.f32 %v1429_v44, %v928_v45  ;;  %v1634_v49 = vpop.f32.mrb[27].mxu0 }
 0x5bf   :  { %v1430_v50 = vmul.f32 -1.442695, %v936_v48 }
 0x5c1   :  { %1751 = vpow2.f32 %v1430_v50 }
 0x5cb   :  { %v1752_v51 = vpop.eup %1751 }
 0x5cc   :  { %v940_v52 = vadd.f32 1.0, %v1752_v51 }
 0x5ce   :  { %1753 = vrcp.f32 %v940_v52 }
 0x5d8   :  { %v1754_v53 = vpop.eup %1753 }
 0x5d9   :  { %v943_v54 = vmul.f32 %v1754_v53, %v936_v48 }
 0x5db   :  { %v944_v55 = vpack.c.bf16 %v943_v54, %v943_v54 }
 0x5dd   :  { %v953_v56 = vsel %vm951_vm5, %v944_v55, 0  ;;  %945 = vst.msk [vmem:[#allocation14] sm:$0xf] %vm560_vm3, %v944_v55 }
 0x5de   :  { %1636 = vmatpush3.bf16.msra.mxu1 %v953_v56 }
 0x5df   :  { %1641 = vmatprep.subr.bf16.mxu1 %v1977_v0 }
 0x5e1   :  { %1638 = vmatmul.mubr.msk.bf16.vlgmr.msra.gmra.mrb[20].mxu1 %vm947_vm6, %v946_v57 }
 0x5e2   :  { %1642 = vmatpush3.bf16.msra.mxu1 %v953_v56  ;;  %1643 = vmatprep.mubr.msk.bf16.mxu1 %vm1978_vm0, %v1977_v0 }
 0x5e3   :  { %1659 = vmatprep.subr.bf16.mxu1 %v1977_v0 }
 0x5e9   :  { %1644 = vmatmul.mubr.msk.bf16.vlgmr.msra.gmra.mrb[24].mxu1 %vm947_vm6, %v1432_v58 }
 0x5ea   :  { %1660 = vmatpush3.bf16.msra.mxu1 %v1731_v59  ;;  %1667 = vmatprep.mubr.msk.bf16.mxu1 %vm1978_vm0, %v1977_v0 }
 0x5eb   :  { %1661 = vmatprep.subr.bf16.mxu1 %v1977_v0 }
 0x5ee   :  { %1662 = vmatpush3.bf16.msra.mxu1 %v1732_v60 }
 0x5ef   :  { %1663 = vmatprep.subr.bf16.mxu1 %v1977_v0 }
 0x5f2   :  { %1664 = vmatpush3.bf16.msra.mxu1 %v1734_v61 }
 0x5f3   :  { %1665 = vmatprep.subr.bf16.mxu1 %v1977_v0 }
 0x5f6   :  { %1666 = vmatpush3.bf16.msra.mxu1 %v1736_v62 }
 0x5f7   :  { %1677 = vmatprep.subr.bf16.mxu1 %v1977_v0 }
 0x6b4   :  { %v989_v2 = vpop.f32.mrb[20].mxu1 }
 0x6b5   :  { %v995_v3 = vpack.c.bf16 %v989_v2, %v989_v2  ;;  %v1639_v4 = vpop.f32.mrb[21].mxu1 }
 0x6b6   :  { %v992_v5 = vpop.f32.mrb[22].mxu1 }
 0x6b7   :  { %v1640_v6 = vpop.f32.mrb[23].mxu1  ;;  %1668 = vmatmul.mubr.msk.bf16.vlgmr.msra.gmra.mrb[28].mxu1 %vm284_vm2, %v995_v3 }
 0x6b8   :  { %1685 = vmatprep.mubr.msk.bf16.mxu1 %vm1978_vm0, %v1977_v0  ;;  %1678 = vmatpush3.bf16.msra.mxu1 %v1739_v13 }
 0x6b9   :  { %1679 = vmatprep.subr.bf16.mxu1 %v1977_v0 }
 0x6bc   :  { %v1043_v7 = vpop.f32.mrb[24].mxu1  ;;  %1680 = vmatpush3.bf16.msra.mxu1 %v1740_v14 }
 0x6bd   :  { %v1049_v8 = vpack.c.bf16 %v1043_v7, %v1043_v7  ;;  %v1645_v9 = vpop.f32.mrb[25].mxu1  ;;  %1681 = vmatprep.subr.bf16.mxu1 %v1977_v0 }
 0x6be   :  { %v1046_v10 = vpop.f32.mrb[26].mxu1 }
 0x6bf   :  { %1656 = vmatmul.mubr.msk.bf16.vlgmr.msra.gmra.mrb[28].mxu0 %vm284_vm2, %v1049_v8  ;;  %v1646_v11 = vpop.f32.mrb[27].mxu1 }
 0x6c0   :  { %1672 = vmatpush3.bf16.msra.mxu0 %v953_v56  ;;  %1673 = vmatprep.mubr.msk.bf16.mxu0 %vm1978_vm0, %v1977_v0 }
 0x6c1   :  { %1682 = vmatpush3.bf16.msra.mxu1 %v1741_v15 }
 0x6c2   :  { %1683 = vmatprep.subr.bf16.mxu1 %v1977_v0 }
 0x6c5   :  { %1684 = vmatpush3.bf16.msra.mxu1 %v1742_v16 }
 0x6c7   :  { %1674 = vmatmul.mubr.msk.bf16.vlgmr.msra.gmra.mrb[32].mxu0 %vm947_vm6, %v1444_v12 }
 0x78a   :  { %v1187_v17 = vpop.f32.mrb[28].mxu1 }
 0x78b   :  { %v1669_v18 = vpop.f32.mrb[29].mxu1 }
 0x78c   :  { %v1190_v19 = vpop.f32.mrb[30].mxu1 }
 0x78d   :  { %v1670_v20 = vpop.f32.mrb[31].mxu1 }
 0x792   :  { %v1120_v21 = vpop.f32.mrb[28].mxu0 }
 0x793   :  { %v1188_v22 = vadd.f32 %v1187_v17, %v1120_v21  ;;  %v1657_v23 = vpop.f32.mrb[29].mxu0 }
 0x794   :  { %v1123_v24 = vpop.f32.mrb[30].mxu0 }
 0x795   :  { %v1658_v25 = vpop.f32.mrb[31].mxu0 }
 0x79a   :  { %v1232_v26 = vpop.f32.mrb[32].mxu0 }
 0x79b   :  { %v1238_v27 = vpack.c.bf16 %v1232_v26, %v1232_v26  ;;  %v1675_v28 = vpop.f32.mrb[33].mxu0 }
 0x79c   :  { %v1235_v29 = vpop.f32.mrb[34].mxu0 }
 0x79d   :  { %1686 = vmatmul.mubr.msk.bf16.vlgmr.msra.gmra.mrb[32].mxu1 %vm284_vm2, %v1238_v27  ;;  %v1676_v30 = vpop.f32.mrb[35].mxu0 }
 0x79e   :  { %1902 = shalt.err (!%p1899_p10)
}
 0x79f   :  { %s1903_s20 = scalar_lea.hbm %s2342_s11, 64 }
 0x7a0   :  { %p1904_p11 = scmp.ne.s32.totalorder %s2342_s11, %s1903_s20  ;;  %p1907_p12 = scmp.lt.u32.totalorder %s1903_s20, %s2342_s11 }
 0x7a2   :  { %p1909_p13 = pnand %p1907_p12, %p1904_p11 }
 0x7a4   :  { %1912 = shalt.err (!%p1909_p13)
}
 0x7a5   :  { %1355 = dma.vmem_to_hbm [thread:$0]  %s1353_s30, 64, %s2342_s11, [#allocation15]  }
 0x7a6   :  { %s1913_s3 = scalar_lea.vmem %s2282_s18, 128  ;;  %p1918_p1 = scmp.lt.s32.totalorder %s2282_s18, %s2282_s18 }
 0x7a7   :  { %p1914_p0 = scmp.ne.s32.totalorder %s2282_s18, %s1913_s3  ;;  %p1919_p2 = scmp.lt.s32.totalorder %s1913_s3, %s1913_s3 }
 0x7a9   :  { %p1920_p3 = por %p1919_p2, %p1918_p1 }
 0x7ab   :  { %p1921_p4 = pnand %p1920_p3, %p1914_p0 }
 0x7ad   :  { %1924 = shalt.err (!%p1921_p4)
}
 0x7ae   :  { %s1925_s5 = scalar_lea.hbm %s2341_s10, 128 }
 0x7af   :  { %p1926_p5 = scmp.ne.s32.totalorder %s2341_s10, %s1925_s5  ;;  %p1929_p6 = scmp.lt.u32.totalorder %s1925_s5, %s2341_s10 }
 0x7b1   :  { %p1931_p7 = pnand %p1929_p6, %p1926_p5 }
 0x7b3   :  { %1934 = shalt.err (!%p1931_p7)
}
 0x7b4   :  { %1345 = dma.vmem_to_hbm [thread:$0]  %s2282_s18, 128, %s2341_s10, [#allocation4], %s1971_s15, %s1971_s15, %s1972_s16   ;;  %vm1332_vm7 = vcmask 517120  }
 0x7b5   :  { %v1451_v31 = vld [vmem:[%s2340_s9] ss:$0 sm:$0xff]  ;;  %s1981_s8 = smov [#allocation16]  }
 0x7b6   :  { %s1362_s30 = sshll.u32 %s1981_s8, 4  ;;  %s1363_s30 = int_to_ptr.vmem [resolvable:$true] %s1362_s30 }
 0x7b7   :  { %s1935_s10 = scalar_lea.vmem %s1363_s30, 32  ;;  %p1940_p9 = scmp.lt.s32.totalorder %s1363_s30, %s1363_s30 }
 0x7b8   :  { %p1936_p8 = scmp.ne.s32.totalorder %s1363_s30, %s1935_s10  ;;  %p1941_p10 = scmp.lt.s32.totalorder %s1935_s10, %s1935_s10 }
 0x7ba   :  { %p1942_p11 = por %p1941_p10, %p1940_p9 }
 0x7bc   :  { %p1943_p12 = pnand %p1942_p11, %p1936_p8 }
 0x870   :  { %v1309_v0 = vpop.f32.mrb[32].mxu1 }
 0x871   :  { %v1315_v32 = vadd.f32 %v1309_v0, %v1188_v22  ;;  %v1687_v33 = vpop.f32.mrb[33].mxu1 }
 0x872   :  { %v1312_v34 = vpop.f32.mrb[34].mxu1 }
 0x873   :  { %v1323_v35 = vadd.f32 %v1451_v31, %v1315_v32  ;;  %v1688_v36 = vpop.f32.mrb[35].mxu1 }
 0x875   :  { %v1452_v37 = vmul.f32 -1.442695, %v1323_v35 }
 0x877   :  { %1755 = vpow2.f32 %v1452_v37 }
 0x881   :  { %v1756_v38 = vpop.eup %1755 }
 0x882   :  { %v1327_v39 = vadd.f32 1.0, %v1756_v38 }
 0x884   :  { %1757 = vrcp.f32 %v1327_v39 }
 0x88e   :  { %v1758_v40 = vpop.eup %1757 }
 0x88f   :  { %v1330_v41 = vmul.f32 %v1758_v40, %v1323_v35 }
 0x891   :  { %v1331_v42 = vpack.c.bf16 %v1330_v41, %v1330_v41 }
 0x893   :  { %1333 = vst.msk [vmem:[#allocation16] sm:$0x3] %vm1332_vm7, %v1331_v42 }
 0x894   :  { %1946 = shalt.err (!%p1943_p12)
}
 0x895   :  { %s1947_s16 = scalar_lea.hbm %s2343_s12, 32 }
 0x896   :  { %p1948_p13 = scmp.ne.s32.totalorder %s2343_s12, %s1947_s16  ;;  %p1951_p0 = scmp.lt.u32.totalorder %s1947_s16, %s2343_s12 }
 0x898   :  { %p1953_p1 = pnand %p1951_p0, %p1948_p13 }
 0x89a   :  { %1956 = shalt.err (!%p1953_p1)
}
 0x89b   :  { %1365 = dma.vmem_to_hbm [thread:$0]  %s1363_s30, 32, %s2343_s12, [#allocation15]  }
 0x89c   :  { %1965 = dma.done.wait [#allocation4], 128  }
 0x89d   :  { %1966 = vsyncadd [#allocation4], 4294967168 }
 0x89e   :  { %1967 = dma.done.wait [#allocation15], 96  }
 0x89f   :  { %1968 = vsyncadd [#allocation15], 4294967200 }
 0x8a0   :  { %1375 = vsyncpa [#allocation3], 1 }
 0x8a1   :  { %1376 = vsyncpa [#allocation6], 1 }
 0x8a2   :  { %1377 = vsyncpa [#allocation9], 1 }
 0x8a3   :  { %1378 = vsyncpa [#allocation12], 1 }
 0x8a4   :  { %1379 = vsyncpa [#allocation4], 1 }
 0x8a5   :  { %1380 = vsyncpa [#allocation15], 1 }

</bundles_post_ra>
